<compile_context>
chip_gen: v7x
topology: tpu7x:2x2x1
jax: 0.10.0
libtpu: 0.0.40
codegen_flags: <defaults>
</compile_context>

<pallas_src>
import functools

import jax
import jax.numpy as jnp
from jax.experimental import pallas as pl
from jax.experimental.pallas import tpu as pltpu

_LANE = 128


def _round_up(v, m):
    return (v + m - 1) // m * m


def _pick_row_tile(n_pad):
    # Largest tile (multiple of 8) that divides n_pad and leaves >= 2 grid
    # steps (so both v7x TensorCores get work); otherwise largest divisor.
    for tm in (128, 64, 32, 16, 8):
        if n_pad % tm == 0 and n_pad // tm >= 2:
            return tm
    for tm in (128, 64, 32, 16, 8):
        if n_pad % tm == 0:
            return tm
    return n_pad


def _masked_log_softmax(h, num_valid):
    # Row-wise log_softmax over the first `num_valid` columns of a lane-dense
    # f32 slab; padded columns are excluded from the max / exp-sum and
    # written back as 0 (sliced away by the wrapper).
    col = jax.lax.broadcasted_iota(jnp.int32, h.shape, dimension=1)
    valid = col < num_valid
    hm = jnp.where(valid, h, -jnp.inf)
    m = jnp.max(hm, axis=1, keepdims=True)
    shifted = hm - m
    lse = jnp.log(jnp.sum(jnp.exp(shifted), axis=1, keepdims=True))
    return jnp.where(valid, shifted - lse, 0.0)


def _xw_kernel(x_ref, w_ref, o_ref):
    # support = x @ W  (bf16 in, f32 accumulate on MXU, bf16 out)
    acc = jnp.dot(x_ref[...], w_ref[...], preferred_element_type=jnp.float32)
    o_ref[...] = acc.astype(o_ref.dtype)


def _prop_kernel(adj_ref, h_ref, o_ref):
    # h_new[row tile] = adj[row tile, :] @ h
    acc = jnp.dot(adj_ref[...], h_ref[...], preferred_element_type=jnp.float32)
    o_ref[...] = acc.astype(o_ref.dtype)


def _prop_final_kernel(adj_ref, h_ref, b_ref, o_ref, *, num_valid: int):
    # Last propagation layer fused with bias add + masked log-softmax.
    acc = jnp.dot(adj_ref[...], h_ref[...], preferred_element_type=jnp.float32)
    o_ref[...] = _masked_log_softmax(acc + b_ref[...], num_valid).astype(o_ref.dtype)


def _bias_logsoftmax_kernel(h_ref, b_ref, o_ref, *, num_valid: int):
    # nlayers == 0 path: no propagation, just bias + log-softmax.
    h = h_ref[...].astype(jnp.float32) + b_ref[...]
    o_ref[...] = _masked_log_softmax(h, num_valid).astype(o_ref.dtype)


def sgc_forward(x, adj, weight, bias, *, nlayers: int = 2):
    """x: [N, F] f32, adj: [N, N] f32 (dense, normalized), weight: [F, C] f32,
    bias: [C] f32.  Returns log_softmax((adj^nlayers) @ (x @ W) + bias) [N, C]."""
    N, F = x.shape
    C = weight.shape[1]
    NP = _round_up(N, 8)
    FP = _round_up(F, _LANE)
    CP = _round_up(C, _LANE)
    TM = _pick_row_tile(NP)
    grid = (NP // TM,)

    # Zero-pad to lane-dense shapes (numerically free) and cast the MXU
    # operands to bf16; bias stays f32 for the epilogue.
    xb = jnp.pad(x, ((0, NP - N), (0, FP - F))).astype(jnp.bfloat16)
    adjb = jnp.pad(adj, ((0, NP - N), (0, NP - N))).astype(jnp.bfloat16)
    wb = jnp.pad(weight, ((0, FP - F), (0, CP - C))).astype(jnp.bfloat16)
    b2d = jnp.pad(bias, (0, CP - C)).reshape(1, CP).astype(jnp.float32)

    parallel = pltpu.CompilerParams(dimension_semantics=("parallel",))

    adj_spec = pl.BlockSpec((TM, NP), lambda i: (i, 0))   # row tile of adj
    h_full_spec = pl.BlockSpec((NP, CP), lambda i: (0, 0))  # full running h
    row_tile_spec = pl.BlockSpec((TM, CP), lambda i: (i, 0))
    bias_spec = pl.BlockSpec((1, CP), lambda i: (0, 0))

    # --- support = x @ W --------------------------------------------------
    h = pl.pallas_call(
        _xw_kernel,
        out_shape=jax.ShapeDtypeStruct((NP, CP), jnp.bfloat16),
        grid=grid,
        in_specs=[
            pl.BlockSpec((TM, FP), lambda i: (i, 0)),
            pl.BlockSpec((FP, CP), lambda i: (0, 0)),
        ],
        out_specs=row_tile_spec,
        compiler_params=parallel,
        cost_estimate=pl.CostEstimate(
            flops=2 * NP * FP * CP,
            transcendentals=0,
            bytes_accessed=2 * (NP * FP + FP * CP + NP * CP),
        ),
    )(xb, wb)

    prop_cost = pl.CostEstimate(
        flops=2 * NP * NP * CP,
        transcendentals=0,
        bytes_accessed=2 * (NP * NP + 2 * NP * CP),
    )

    # --- intermediate propagation layers (all but the last) ---------------
    for _ in range(max(nlayers - 1, 0)):
        h = pl.pallas_call(
            _prop_kernel,
            out_shape=jax.ShapeDtypeStruct((NP, CP), jnp.bfloat16),
            grid=grid,
            in_specs=[adj_spec, h_full_spec],
            out_specs=row_tile_spec,
            compiler_params=parallel,
            cost_estimate=prop_cost,
        )(adjb, h)

    # --- last layer: propagation fused with bias + masked log_softmax -----
    if nlayers >= 1:
        out = pl.pallas_call(
            functools.partial(_prop_final_kernel, num_valid=C),
            out_shape=jax.ShapeDtypeStruct((NP, CP), jnp.float32),
            grid=grid,
            in_specs=[adj_spec, h_full_spec, bias_spec],
            out_specs=row_tile_spec,
            compiler_params=parallel,
            cost_estimate=pl.CostEstimate(
                flops=2 * NP * NP * CP + 6 * NP * CP,
                transcendentals=NP * CP + NP,
                bytes_accessed=2 * NP * NP + 2 * NP * CP + 4 * CP + 4 * NP * CP,
            ),
        )(adjb, h, b2d)
    else:
        out = pl.pallas_call(
            functools.partial(_bias_logsoftmax_kernel, num_valid=C),
            out_shape=jax.ShapeDtypeStruct((NP, CP), jnp.float32),
            grid=grid,
            in_specs=[row_tile_spec, bias_spec],
            out_specs=row_tile_spec,
            compiler_params=parallel,
            cost_estimate=pl.CostEstimate(
                flops=6 * NP * CP,
                transcendentals=NP * CP + NP,
                bytes_accessed=2 * NP * CP + 4 * CP + 4 * NP * CP,
            ),
        )(h, b2d)

    # Kernel writes a lane-dense [NP, 128] slab; slice the real rows/classes.
    return out[:N, :C]


def init_sgc_params(key, num_features: int, num_classes: int):
    """Mirrors GraphConvolution.reset_parameters: xavier_uniform on weight.T
    (fan in/out swap is symmetric for uniform), bias zeros."""
    bound = (6.0 / (num_features + num_classes)) ** 0.5
    weight = jax.random.uniform(
        key, (num_features, num_classes), dtype=jnp.float32,
        minval=-bound, maxval=bound)
    bias = jnp.zeros((num_classes,), dtype=jnp.float32)
    return weight, bias


def sgc_reference(x, adj, weight, bias, *, nlayers: int = 2):
    h = x @ weight
    for _ in range(nlayers):
        h = adj @ h
    h = h + bias
    return jax.nn.log_softmax(h, axis=1)


if __name__ == "__main__":
    N, F, C = 64, 32, 16   # nodes, features, classes (small synthetic graph)
    nlayers = 2

    key = jax.random.PRNGKey(0)
    kx, kadj, kw = jax.random.split(key, 3)

    x = jax.random.normal(kx, (N, F), dtype=jnp.float32)

    # Symmetric, row-normalized dense adjacency (as SGC sees after
    # normalize_adj, densified here for the kernel).
    # TODO(synk): sparse adj (torch.spmm / torch_sparse) path handled as dense.
    a = jax.random.uniform(kadj, (N, N), dtype=jnp.float32)
    a = (a > 0.8).astype(jnp.float32)
    a = jnp.maximum(a, a.T) + jnp.eye(N, dtype=jnp.float32)
    deg = jnp.sum(a, axis=1, keepdims=True)
    adj = a / deg

    weight, bias = init_sgc_params(kw, F, C)

    out = sgc_forward(x, adj, weight, bias, nlayers=nlayers)
    out = jax.block_until_ready(out)

    ref = sgc_reference(x, adj, weight, bias, nlayers=nlayers)
    assert out.shape == (N, C)
    # bf16 MXU inputs vs pure-f32 reference -> loosened tolerance.
    assert jnp.allclose(out, ref, atol=5e-2, rtol=5e-2), "mismatch vs reference"

    print("KERNEL_OK")
</pallas_src>

<mosaic_0001>
module attributes {stable_mosaic.version = 11 : i64} {
  func.func @_xw_kernel(%arg0: i32, %arg1: memref<32x128xbf16, #tpu.memory_space<vmem>>, %arg2: memref<128x128xbf16, #tpu.memory_space<vmem>>, %arg3: memref<32x128xbf16, #tpu.memory_space<vmem>>) attributes {dimension_semantics = [#tpu.dimension_semantics<parallel>], iteration_bounds = array<i64: 2>, scalar_prefetch = 0 : i64, scratch_operands = 0 : i64, tpu.core_type = #tpu.core_type<tc>, window_params = [{transform_indices = @transform_0, window_bounds = array<i64: 32, 128>}, {pipeline_mode = #tpu.pipeline_mode<synchronous>, transform_indices = @transform_1, window_bounds = array<i64: 128, 128>}, {transform_indices = @transform_2, window_bounds = array<i64: 32, 128>}]} {
    %c0 = arith.constant 0 : index
    %c0_0 = arith.constant 0 : index
    %0 = vector.load %arg1[%c0, %c0_0] : memref<32x128xbf16, #tpu.memory_space<vmem>>, vector<32x128xbf16>
    %c0_1 = arith.constant 0 : index
    %c0_2 = arith.constant 0 : index
    %1 = vector.load %arg2[%c0_1, %c0_2] : memref<128x128xbf16, #tpu.memory_space<vmem>>, vector<128x128xbf16>
    %cst = arith.constant dense<0.000000e+00> : vector<32x128xf32>
    %2 = tpu.matmul %0, %1, %cst {dimension_numbers = #tpu.dot_dimension_numbers<[1], [0], [0], [1], [0, 0, 1, 1], [], []>} : vector<32x128xbf16>, vector<128x128xbf16>, vector<32x128xf32> -> vector<32x128xf32>
    %3 = arith.truncf %2 : vector<32x128xf32> to vector<32x128xbf16>
    %c0_3 = arith.constant 0 : index
    %c0_4 = arith.constant 0 : index
    %4 = vector.load %arg3[%c0_3, %c0_4] : memref<32x128xbf16, #tpu.memory_space<vmem>>, vector<32x128xbf16>
    tpu.vector_store %arg3[%c0_3, %c0_4], %3 {strides = array<i32>} : memref<32x128xbf16, #tpu.memory_space<vmem>>, vector<32x128xbf16>,
    return
  }
  func.func @transform_0(%arg0: i32) -> (i32, i32) {
    %c0_i32 = arith.constant 0 : i32
    %c0_i32_0 = arith.constant 0 : i32
    return %arg0, %c0_i32 : i32, i32
  }
  func.func @transform_1(%arg0: i32) -> (i32, i32) {
    %c0_i32 = arith.constant 0 : i32
    %c0_i32_0 = arith.constant 0 : i32
    %c0_i32_1 = arith.constant 0 : i32
    return %c0_i32, %c0_i32_0 : i32, i32
  }
  func.func @transform_2(%arg0: i32) -> (i32, i32) {
    %c0_i32 = arith.constant 0 : i32
    %c0_i32_0 = arith.constant 0 : i32
    return %arg0, %c0_i32 : i32, i32
  }
}

</mosaic_0001>

<bundles_post_ra>
// kernel: tpu_custom_call.1
= control target key start
LH: loop header
LB: loop body
LE: loop exit
PB: predicated region body
PF: predicated region fallthrough
CT: control target
= control target key end

     0   :  { %7 = vsyncpa [#allocation3], 0  ;;  %s937_s0 = inlined_call_operand.hbm [shape: bf16[64,128], index: 0, kind: input, shape index: {}]   ;;  %s938_s1 = inlined_call_operand.hbm [shape: bf16[128,128], index: 1, kind: input, shape index: {}]   ;;  %s939_s2 = inlined_call_operand.hbm [shape: bf16[64,128], index: 2, kind: output, shape index: {}]  }
   0x1   :  { %9 = vsyncpa [#allocation3 + $0x1], 0 }
   0x2   :  { %10 = vsyncpa [#allocation6], 0 }
   0x3   :  { %11 = vsyncpa [#allocation4], 0 }
   0x4   :  { %13 = vsyncpa [#allocation4 + $0x1], 0  ;;  %s726_s9 = smov 0   ;;  %s728_s10 = smov 0  }
   0x5   :  { %s730_s11 = smov 0   ;;  %s732_s12 = smov 0  }
   0x6 LB: > { %s747_s13 = sadd.s32 4294967295, %s702_s12   ;;  %s426_s14 = sadd.s32 4294967294, %s702_s12   ;;  %s702_s12 = sphi %s732_s12, %s959_s12   ;;  %s698_s11 = sphi %s730_s11, %s958_s11   ;;  %s694_s10 = sphi %s728_s10, %s957_s10   ;;  %s690_s9 = sphi %s726_s9, %s956_s9  }
   0x7   : > { %p39_p0 = scmp.ne.s32.totalorder %s694_s10, %s690_s9  ;;  %p940_p1 = scmp.eq.s32.totalorder %s747_s13, 0 }
   0x8   : > { %p90_p3 = scmp.eq.s32.totalorder %s426_s14, 1  ;;  %p427_p5 = scmp.ge.s32.totalorder %s702_s12, 1 }
   0x9   : > { %p756_p4 = por %p940_p1, %p39_p0  ;;  %p97_p7 = scmp.lt.s32.totalorder %s702_s12, 3 }
   0xa   : > { %p761_p6 = por %p90_p3, %p39_p0  ;;  %s704_s18 = smov [#allocation5]  }
   0xb   : > { %s943_s15 = scalar_select %p756_p4, 1, 0 }
   0xc   : > { %s944_s16 = scalar_select %p761_p6, 1, 0 }
   0xd   : > { %p766_p8 = pnand %p427_p5, %p97_p7  ;;  %s109_s19 = sshll.u32 %s704_s18, 4  ;;  %s770_s19 = int_to_ptr.vmem [resolvable:$true] %s109_s19 }
   0xe   : > { %s782_s21 = sadd.s32 1, %s702_s12   ;;  %s26_s22 = sadd.s32 1, %s698_s11 }
   0xf   : > { %s945_s17 = scalar_select %p766_p8, 1, 0 }
  0x10   : > { %p511_p9 = pneg %p766_p8  ;;  %s23_s23 = ssub.s32 %s702_s12, %s782_s21 }
  0x11   : > { %s574_s26 = scalar_lea.hbm %s938_s1, 1024 }
  0x12   : > { %p777_p11 = pnand %p511_p9, %p940_p1  ;;  %p575_p12 = scmp.ne.s32.totalorder %s938_s1, %s574_s26 }
  0x13   : > { %p581_p5 = scmp.lt.u32.totalorder %s574_s26, %s938_s1 }
  0x14   : > { %p576_p13 = pneg %p777_p11 }
  0x16   : > { %p577_p0 = pnand %p576_p13, %p575_p12 }
  0x18   : > { %p578_p3 = pneg %p577_p0 }
  0x1a   : > { %p583_p7 = pnand %p581_p5, %p578_p3 }
  0x1c   : > { %586 = shalt.err (!%p583_p7)
}
  0x1d   : > { %s587_s3 = scalar_lea.vmem %s770_s19, 1024  ;;  %p595_p2 = scmp.lt.s32.totalorder %s770_s19, %s770_s19 }
  0x1e   : > { %p588_p9 = scmp.ne.s32.totalorder %s770_s19, %s587_s3  ;;  %p596_p6 = scmp.lt.s32.totalorder %s587_s3, %s587_s3 }
  0x20   : > { %p590_p10 = pnand %p588_p9, %p576_p13  ;;  %p597_p4 = por %p596_p6, %p595_p2 }
  0x22   : > { %p591_p1 = pneg %p590_p10 }
  0x24   : > { %p598_p8 = pnand %p597_p4, %p591_p1 }
  0x26   : > { %601 = shalt.err (!%p598_p8)
}
  0x27   : > { %s705_s4 = smov 64   ;;  %s706_s5 = smov 4  }
  0x28   : > { %514 = dma.hbm_to_vmem [thread:$0]  (!%p777_p11), %s938_s1, 1024, %s770_s19, [#allocation6], %s705_s4, %s705_s4, %s706_s5  }
  0x29   : > { %p24_p1 = scmp.eq.s32.totalorder %s23_s23, 0  ;;  %p33_p2 = scmp.ne.s32.totalorder %s698_s11, %s694_s10 }
  0x2a   : > { %p34_p4 = scmp.eq.s32.totalorder %s702_s12, 0  ;;  %p524_p6 = scmp.lt.s32.totalorder %s702_s12, 2 }
  0x2b   : > { %s816_s8 = scalar_select %p24_p1, %s698_s11, %s26_s22  }
  0x2c   : > { %p35_p8 = por %p34_p4, %p33_p2  ;;  %p947_p10 = scmp.eq.s32.totalorder %s747_s13, 1 }
  0x2d   : > { %s123_s18 = sand.u32 1, %s698_s11   ;;  %s456_s20 = sshll.u32 %s702_s12, 8 }
  0x2e   : > { %p820_p12 = por %p947_p10, %p33_p2  ;;  %s430_s24 = sshll.u32 %s123_s18, 4 }
  0x2f   : > { %s829_s27 = scalar_lea.hbm %s937_s0, %s456_s20  ;;  %s127_s19 = scalar_lea.vmem [#allocation2], %s430_s24 }
  0x30   : > { %s134_s22 = sshll.u32 %s127_s19, 4  ;;  %p831_p11 = pnand %p524_p6, %p35_p8  ;;  %s835_s22 = int_to_ptr.vmem [resolvable:$true] %s134_s22 }
  0x31   : > { %s837_s28 = scalar_lea.sflag [#allocation3], %s123_s18  ;;  %s602_s29 = scalar_lea.hbm %s829_s27, 256 }
  0x32   : > { %p603_p13 = scmp.ne.s32.totalorder %s829_s27, %s602_s29  ;;  %p604_p0 = pneg %p831_p11 }
  0x33   : > { %s607_s6 = scalar_lea.hbm %s937_s0, 512  ;;  %p608_p7 = scmp.lt.u32.totalorder %s829_s27, %s937_s0 }
  0x34   : > { %p605_p3 = pnand %p604_p0, %p603_p13  ;;  %p609_p9 = scmp.lt.u32.totalorder %s607_s6, %s602_s29 }
  0x35   : > { %p611_p2 = scmp.lt.u32.totalorder %s602_s29, %s829_s27 }
  0x36   : > { %p606_p5 = pneg %p605_p3  ;;  %p610_p1 = por %p609_p9, %p608_p7 }
  0x38   : > { %p612_p4 = por %p611_p2, %p610_p1 }
  0x3a   : > { %p613_p6 = pnand %p612_p4, %p606_p5 }
  0x3c   : > { %616 = shalt.err (!%p613_p6)
}
  0x3d   : > { %s617_s18 = scalar_lea.vmem %s835_s22, 256  ;;  %s707_s24 = smov [#allocation2]  }
  0x3e   : > { %p618_p8 = scmp.ne.s32.totalorder %s835_s22, %s617_s18  ;;  %s622_s25 = sshll.u32 %s707_s24, 4  ;;  %s623_s25 = int_to_ptr.vmem [resolvable:$false] %s622_s25 }
  0x3f   : > { %s624_s26 = scalar_lea.vmem %s623_s25, 512  ;;  %p625_p3 = scmp.lt.s32.totalorder %s835_s22, %s623_s25 }
  0x40   : > { %p620_p10 = pnand %p618_p8, %p604_p0  ;;  %p626_p7 = scmp.lt.s32.totalorder %s624_s26, %s617_s18 }
  0x42   : > { %p621_p13 = pneg %p620_p10  ;;  %p627_p9 = por %p626_p7, %p625_p3 }
  0x44   : > { %p628_p1 = pnand %p627_p9, %p621_p13 }
  0x46   : > { %631 = shalt.err (!%p628_p1)
}
  0x47   : > { %518 = dma.hbm_to_vmem [thread:$0]  (!%p831_p11), %s829_s27, 256, %s835_s22, %s837_s28, %s705_s4, %s705_s4, %s706_s5  }
  0x48   : > { %p950_p0 = scmp.ne.s32.totalorder %s945_s17, 0 }
  0x49   : > { %s871_s19 = sand.u32 (!%p950_p0), 1, %s694_s10   ;;  %p951_p5 = scmp.ne.s32.totalorder (!%p950_p0), %s943_s15, 0 }
  0x4a   : > { %146 = sbr.rel (%p950_p0) target bundleno = 350 (0x15e), region = 28  ;;  %s434_s29 = sshll.u32 (!%p950_p0), %s871_s19, 4 }
  0x4b   : > { %s149_s30 = scalar_lea.sflag (!%p950_p0), [#allocation3], %s871_s19  ;;  %s152_s23 = scalar_lea.vmem (!%p950_p0), [#allocation2], %s434_s29 }
  0x51   : > { %677 = dma.done.wait (%p951_p5), %s149_s30, 256  }
  0x52   : > { %679 = vsyncadd (%p951_p5), %s149_s30, 4294967040  ;;  %p952_p11 = scmp.eq.s32.totalorder %s747_s13, 0 }
  0x54   : > { %681 = dma.done.wait (%p952_p11), [#allocation6], 1024   ;;  %p953_p2 = pmov %p952_p11 }
  0x55   : > { %v564_v0 = vld [vmem:[#allocation5] sm:$0xff]   ;;  %v565_v1 = vld [vmem:[#allocation5 + $0x8] sm:$0xff]   ;;  %v566_v2 = vld [vmem:[#allocation5 + $0x10] sm:$0xff]   ;;  %s176_s15 = scalar_lea.vmem [#allocation7], %s434_s29  ;;  %s461_s4 = sshll.u32 %s747_s13, 8 }
  0x56   : > { %683 = vsyncadd (%p953_p2), [#allocation6], 4294966272  ;;  %483 = vmatprep.subr.bf16.mxu0 %v564_v0  ;;  %v567_v3 = vld [vmem:[#allocation5 + $0x18] sm:$0xff]   ;;  %v572_v4 = vld [vmem:[%s152_s23] sm:$0xff]   ;;  %s343_s17 = sshll.u32 %s176_s15, 4  ;;  %s893_s22 = scalar_lea.hbm %s939_s2, %s461_s4  ;;  %s888_s17 = int_to_ptr.vmem [resolvable:$true] %s343_s17 }
  0x57   : > { %484 = vmatpush3.bf16.msra.mxu0 %v564_v0  ;;  %499 = vmatprep.mubr.bf16.mxu0 %v572_v4  ;;  %v568_v5 = vld [vmem:[#allocation5 + $0x20] sm:$0xff]   ;;  %v569_v6 = vld [vmem:[#allocation5 + $0x28] sm:$0xff]   ;;  %v570_v7 = vld [vmem:[#allocation5 + $0x30] sm:$0xff]   ;;  %s330_s28 = scalar_lea.sflag [#allocation4], %s871_s19  ;;  %s632_s3 = scalar_lea.vmem %s888_s17, 256 }
  0x58   : > { %485 = vmatprep.subr.bf16.mxu0 %v565_v1  ;;  %v571_v8 = vld [vmem:[#allocation5 + $0x38] sm:$0xff]   ;;  %p633_p4 = scmp.ne.s32.totalorder %s888_s17, %s632_s3  ;;  %s708_s13 = smov [#allocation7]  }
  0x59   : > { %v573_v9 = vld [vmem:[%s152_s23 + $0x8] sm:$0xff]   ;;  %s636_s6 = sshll.u32 %s708_s13, 4  ;;  %s637_s6 = int_to_ptr.vmem [resolvable:$false] %s636_s6 }
  0x5a   : > { %p634_p6 = pnand %p633_p4, %p820_p12  ;;  %s638_s7 = scalar_lea.vmem %s637_s6, 512 }
  0x5b   : > { %486 = vmatpush3.bf16.msra.mxu0 %v565_v1  ;;  %p639_p10 = scmp.lt.s32.totalorder %s888_s17, %s637_s6  ;;  %p640_p13 = scmp.lt.s32.totalorder %s638_s7, %s632_s3 }
  0x5c   : > { %487 = vmatprep.subr.bf16.mxu0 %v566_v2  ;;  %p635_p8 = pneg %p634_p6 }
  0x5d   : > { %p641_p3 = por %p640_p13, %p639_p10 }
  0x5f   : > { %488 = vmatpush3.bf16.msra.mxu0 %v566_v2  ;;  %p642_p7 = pnand %p641_p3, %p635_p8 }
  0x60   : > { %489 = vmatprep.subr.bf16.mxu0 %v567_v3 }
  0x63   : > { %490 = vmatpush3.bf16.msra.mxu0 %v567_v3 }
  0x64   : > { %491 = vmatprep.subr.bf16.mxu0 %v568_v5 }
  0x67   : > { %492 = vmatpush3.bf16.msra.mxu0 %v568_v5 }
  0x68   : > { %493 = vmatprep.subr.bf16.mxu0 %v569_v6 }
  0x6b   : > { %494 = vmatpush3.bf16.msra.mxu0 %v569_v6 }
  0x6c   : > { %495 = vmatprep.subr.bf16.mxu0 %v570_v7 }
  0x6f   : > { %496 = vmatpush3.bf16.msra.mxu0 %v570_v7 }
  0x70   : > { %497 = vmatprep.subr.bf16.mxu0 %v571_v8 }
  0x73   : > { %498 = vmatpush3.bf16.msra.mxu0 %v571_v8 }
  0x76   : > { %500 = vmatmul.mubr.bf16.vlgmr.msra.gmra.mrb[0].mxu0 %v573_v9 }
 0x149   : > { %v501_v10 = vpop.f32.mrb[0].mxu0 }
 0x14a   : > { %v294_v11 = vpop.f32.mrb[1].mxu0 }
 0x14b   : > { %v502_v12 = vpop.f32.mrb[2].mxu0 }
 0x14c   : > { %v470_v13 = vpack.c.bf16 %v502_v12, %v501_v10  ;;  %v297_v14 = vpop.f32.mrb[3].mxu0 }
 0x14d   : > { %v465_v15 = vpack.c.bf16 %v297_v14, %v294_v11 }
 0x14e   : > { %472 = vst [vmem:[%s176_s15 + $0x8] sm:$0xff] %v470_v13  }
 0x14f   : > { %466 = vst [vmem:[%s176_s15] sm:$0xff] %v465_v15  }
 0x150   : > { %645 = shalt.err (!%p642_p7)
}
 0x151   : > { %s646_s20 = scalar_lea.hbm %s893_s22, 256  ;;  %s650_s25 = scalar_lea.hbm %s939_s2, 512 }
 0x152   : > { %p647_p9 = scmp.ne.s32.totalorder %s893_s22, %s646_s20  ;;  %p651_p5 = scmp.lt.u32.totalorder %s893_s22, %s939_s2 }
 0x153   : > { %p652_p11 = scmp.lt.u32.totalorder %s650_s25, %s646_s20  ;;  %p654_p4 = scmp.lt.u32.totalorder %s646_s20, %s893_s22 }
 0x154   : > { %p648_p1 = pnand %p647_p9, %p820_p12 }
 0x155   : > { %p653_p2 = por %p652_p11, %p651_p5 }
 0x156   : > { %p649_p0 = pneg %p648_p1 }
 0x157   : > { %p655_p6 = por %p654_p4, %p653_p2 }
 0x159   : > { %p656_p8 = pnand %p655_p6, %p649_p0 }
 0x15b   : > { %659 = shalt.err (!%p656_p8)
}
 0x15c   : > { %s709_s30 = smov 64   ;;  %s710_s23 = smov 4  }
 0x15d   : > { %509 = dma.vmem_to_hbm [thread:$0]  (%p820_p12), %s888_s17, 256, %s893_s22, %s330_s28, %s709_s30, %s709_s30, %s710_s23  }
 0x15e PF: > { %s358_s15 = sand.u32 1, %s690_s9   ;;  %p954_p10 = scmp.ne.s32.totalorder %s944_s16, 0 }
 0x15f   : > { %p955_p13 = scmp.ge.s32.totalorder %s702_s12, 2  ;;  %s359_s4 = scalar_lea.sflag [#allocation4], %s358_s15 }
 0x161   : > { %p520_p3 = pnand %p955_p13, %p954_p10 }
 0x163   : > { %685 = dma.done.wait (!%p520_p3), %s359_s4, 256  }
 0x164   : > { %687 = vsyncadd (!%p520_p3), %s359_s4, 4294967040  ;;  %p16_p7 = scmp.ge.s32.totalorder %s782_s21, 4   ;;  %s956_s9 = smov %s694_s10 }
 0x165   : > { %s957_s10 = smov %s698_s11  ;;  %s958_s11 = smov %s816_s8 }
 0x166   : > { %s959_s12 = smov %s782_s21  ;;  %18 = sbr.rel (!%p16_p7) target bundleno = 6 (0x6), region = 77 }
 0x16d   :  { %364 = vsyncpa [#allocation3], 1 }
 0x16e   :  { %366 = vsyncpa [#allocation3 + $0x1], 1 }
 0x16f   :  { %367 = vsyncpa [#allocation6], 1 }
 0x170   :  { %368 = vsyncpa [#allocation4], 1 }
 0x171   :  { %370 = vsyncpa [#allocation4 + $0x1], 1 }

</bundles_post_ra>
